<compile_context>
chip_gen: v7x
topology: tpu7x:2x2x1
jax: 0.10.0
libtpu: 0.0.40
codegen_flags: <defaults>
</compile_context>

<pallas_src>
import numpy as np
import jax
import jax.numpy as jnp
from jax.experimental import pallas as pl
from jax.experimental.pallas import tpu as pltpu

_LANES = 128
_LANE_BITS = 7  # log2(_LANES)


# ----------------------------------------------------------------------------
# Host-side precompute: embedded operators / coefficient tables (float64).
# ----------------------------------------------------------------------------
def _lane_embed(gate, target):
    """128x128 operator L for a gate whose targets are all lane bits (<7)."""
    k = len(target)
    L = np.zeros((_LANES, _LANES), np.float64)
    for l_in in range(_LANES):
        j_in, base = 0, l_in
        for m, t in enumerate(target):
            j_in |= ((l_in >> t) & 1) << m
            base &= ~(1 << t)
        for j_out in range(1 << k):
            l_out = base
            for m, t in enumerate(target):
                l_out |= ((j_out >> m) & 1) << t
            L[l_out, l_in] = gate[j_out, j_in]
    return L


def _row_coeffs(gate, target, rows):
    """(2^k, rows, 1) Gray-ordered coefficients for a row-bit-only gate."""
    k = len(target)
    r = np.arange(rows)
    j = np.zeros(rows, np.int64)
    for m, t in enumerate(target):
        j |= ((r >> (t - _LANE_BITS)) & 1) << m
    coeff = np.zeros((1 << k, rows, 1), np.float32)
    for i in range(1 << k):
        g = i ^ (i >> 1)                      # Gray code value at step i
        coeff[i, :, 0] = gate[j, j ^ g]
    return coeff


def _mixed_coeffs(gate, target, rows):
    """Row masks (2^kr, rows, 1) + lane coeffs (2^k, 2^kr, 1, 128) for a gate
    with both lane and row targets: c_g(r,l) = sum_v rmask[v][r]*lane[g,v][l]."""
    k = len(target)
    ML = [m for m, t in enumerate(target) if t < _LANE_BITS]
    MR = [m for m, t in enumerate(target) if t >= _LANE_BITS]
    kr = len(MR)

    r = np.arange(rows)
    jr = np.zeros(rows, np.int64)
    for b, m in enumerate(MR):
        jr |= ((r >> (target[m] - _LANE_BITS)) & 1) << b
    row_mask = np.zeros((1 << kr, rows, 1), np.float32)
    for v in range(1 << kr):
        row_mask[v, :, 0] = (jr == v).astype(np.float32)

    l = np.arange(_LANES)
    jl = np.zeros(_LANES, np.int64)
    for a, m in enumerate(ML):
        jl |= ((l >> target[m]) & 1) << a

    lane_c = np.zeros((1 << k, 1 << kr, 1, _LANES), np.float32)
    for i in range(1 << k):
        g = i ^ (i >> 1)
        for v in range(1 << kr):
            j = np.zeros(_LANES, np.int64)
            for a, m in enumerate(ML):
                j |= ((jl >> a) & 1) << m
            for b, m in enumerate(MR):
                j |= ((v >> b) & 1) << m
            lane_c[i, v, 0, :] = gate[j, j ^ g]
    return row_mask, lane_c


def _build_program(targets, gates, rows, fuse):
    """Static op list + the small VMEM side inputs each op references."""
    steps = [(tuple(int(q) for q in t), np.asarray(g, np.float64))
             for t, g in zip(targets, gates)]
    ops, extra = [], []
    i = 0
    while i < len(steps):
        tgt, g = steps[i]
        if all(q < _LANE_BITS for q in tgt):
            lt = _lane_embed(g, tgt).T
            i += 1
            while fuse and i < len(steps) and all(q < _LANE_BITS for q in steps[i][0]):
                lt = lt @ _lane_embed(steps[i][1], steps[i][0]).T   # fuse the run
                i += 1
            extra.append(jnp.asarray(lt, jnp.float32))
            ops.append(("matmul", len(extra) - 1))
        elif all(q >= _LANE_BITS for q in tgt):
            extra.append(jnp.asarray(_row_coeffs(g, tgt, rows)))
            ops.append(("row", tgt, len(extra) - 1))
            i += 1
        else:
            rmask, lane_c = _mixed_coeffs(g, tgt, rows)
            kr = sum(1 for q in tgt if q >= _LANE_BITS)
            extra.append(jnp.asarray(rmask))
            extra.append(jnp.asarray(lane_c))
            ops.append(("mixed", tgt, kr, len(extra) - 2, len(extra) - 1))
            i += 1
    return ops, extra


# ----------------------------------------------------------------------------
# Kernel
# ----------------------------------------------------------------------------
def _make_kernel(ops, rows, num_extra, trace_steps):
    swapped_bits = sorted({q for op in ops if op[0] in ("row", "mixed")
                           for q in op[1]})

    def kernel(*refs):
        state_ref = refs[0]
        extra = refs[1:1 + num_extra]
        out_ref = refs[1 + num_extra]
        if trace_steps:
            trace_ref = refs[2 + num_extra]      # HBM (pl.ANY) trace output
            stage_ref = refs[3 + num_extra]      # (2, rows, 128) VMEM staging
            sem_ref = refs[4 + num_extra]        # DMA sems, one per slot

            def record(step, value):
                slot = step % 2
                if step >= 2:                    # copy issued 2 steps ago done?
                    pltpu.make_async_copy(stage_ref.at[slot],
                                          trace_ref.at[step - 2],
                                          sem_ref.at[slot]).wait()
                stage_ref[slot] = value
                pltpu.make_async_copy(stage_ref.at[slot], trace_ref.at[step],
                                      sem_ref.at[slot]).start()

        state = state_ref[...]

        # "bit == 0" selection masks for every qubit that ever gets swapped —
        # only (1,128) / (rows,1) shapes, hoisted once for the whole circuit.
        mask0 = {}
        if swapped_bits:
            lane_iota = jax.lax.broadcasted_iota(jnp.int32, (1, _LANES), 1)
            row_iota = jax.lax.broadcasted_iota(jnp.int32, (rows, 1), 0)
            for q in swapped_bits:
                if q < _LANE_BITS:
                    mask0[q] = ((lane_iota >> q) & 1) == 0
                else:
                    mask0[q] = ((row_iota >> (q - _LANE_BITS)) & 1) == 0

        def swap_bit(x, q):
            """y[p] = x[p XOR 2**q]  (two XLU rolls + one broadcast select)."""
            if q < _LANE_BITS:
                s = 1 << q
                hi = pltpu.roll(x, _LANES - s, 1)
                lo = pltpu.roll(x, s, 1)
            else:
                s = 1 << (q - _LANE_BITS)
                hi = pltpu.roll(x, rows - s, 0)
                lo = pltpu.roll(x, s, 0)
            return jnp.where(mask0[q], hi, lo)

        step = 0
        for op in ops:
            kind = op[0]
            if kind == "matmul":                 # lane-only gate / fused run -> MXU
                lt = extra[op[1]][...]
                state = jnp.dot(state, lt, preferred_element_type=jnp.float32,
                                precision=jax.lax.Precision.HIGHEST)
            elif kind == "row":                  # row-bit-only gate
                _, tgt, c_idx = op
                cref = extra[c_idx]
                view = state
                acc = cref[0] * view
                for i in range(1, 1 << len(tgt)):            # Gray-code walk
                    view = swap_bit(view, tgt[(i & -i).bit_length() - 1])
                    acc = acc + cref[i] * view
                state = acc
            else:                                # mixed lane/row gate
                _, tgt, kr, rm_idx, lc_idx = op
                rmref, lcref = extra[rm_idx], extra[lc_idx]
                rmask = [rmref[v] for v in range(1 << kr)]    # (rows,1) each
                view, acc = state, None
                for i in range(1 << len(tgt)):                # Gray-code walk
                    if i:
                        view = swap_bit(view, tgt[(i & -i).bit_length() - 1])
                    c = rmask[0] * lcref[i, 0]
                    for v in range(1, 1 << kr):
                        c = c + rmask[v] * lcref[i, v]
                    term = c * view
                    acc = term if acc is None else acc + term
                state = acc

            if trace_steps:
                record(step, state)
                step += 1

        out_ref[...] = state

        if trace_steps:                          # drain the last in-flight DMAs
            for s in range(max(0, trace_steps - 2), trace_steps):
                pltpu.make_async_copy(stage_ref.at[s % 2], trace_ref.at[s],
                                      sem_ref.at[s % 2]).wait()

    return kernel


# ----------------------------------------------------------------------------
# Wrapper
# ----------------------------------------------------------------------------
def _padded_bytes(shape, itemsize=4):
    lead = 1
    for d in shape[:-2]:
        lead *= int(d)
    sub = -(-int(shape[-2]) // 8) * 8
    lane = -(-int(shape[-1]) // 128) * 128
    return lead * sub * lane * itemsize


def _simulate(state, targets, gates, num_qubits, record_trace):
    if num_qubits < _LANE_BITS:
        # TODO(synk): <7 qubits (<128 amplitudes) would need a sub-128-lane slab.
        raise ValueError("quantum_circuit_forward requires num_qubits >= 7")

    rows = (1 << num_qubits) // _LANES
    state2d = jnp.asarray(state, jnp.float32).reshape(rows, _LANES)
    n_steps = len(targets)
    record_trace = bool(record_trace) and n_steps > 0

    # Tracing needs per-step states, so lane-run fusion is disabled there.
    ops, extra = _build_program(targets, gates, rows, fuse=not record_trace)
    kernel = _make_kernel(ops, rows, len(extra), n_steps if record_trace else 0)

    in_specs = [pl.BlockSpec(memory_space=pltpu.MemorySpace.VMEM)] * (1 + len(extra))
    out_shape = jax.ShapeDtypeStruct((rows, _LANES), jnp.float32)
    out_specs = pl.BlockSpec(memory_space=pltpu.MemorySpace.VMEM)
    scratch_shapes = []
    if record_trace:
        out_shape = (out_shape,
                     jax.ShapeDtypeStruct((n_steps, rows, _LANES), jnp.float32))
        out_specs = (out_specs, pl.BlockSpec(memory_space=pl.ANY))   # trace -> HBM
        scratch_shapes = [pltpu.VMEM((2, rows, _LANES), jnp.float32),
                          pltpu.SemaphoreType.DMA((2,))]

    slab = rows * _LANES * 4
    est = (_padded_bytes(state2d.shape)
           + sum(_padded_bytes(a.shape) for a in extra)
           + slab + (2 * slab if record_trace else 0)
           + 8 * slab)                            # headroom for live temporaries
    vmem_limit = int(min(max(2 * est, 8 << 20), 64 << 20))

    result = pl.pallas_call(
        kernel,
        out_shape=out_shape,
        in_specs=in_specs,
        out_specs=out_specs,
        scratch_shapes=scratch_shapes,
        compiler_params=pltpu.CompilerParams(vmem_limit_bytes=vmem_limit),
    )(state2d, *extra)

    if record_trace:
        return result[0], result[1]
    return result, None


def quantum_circuit_forward(state, targets, gates, num_qubits, print_state=True):
    """Exact port of QuantumCircuitSimulator.forward, fused into one Pallas kernel."""
    out2d, trace = _simulate(state, targets, gates, num_qubits,
                             record_trace=print_state)
    if print_state:
        trace = jax.block_until_ready(trace)      # single sync, host-side prints
        for step in range(len(targets)):
            print(step, np.asarray(trace[step]).reshape(-1))
    return out2d.reshape([2] * num_qubits)


# ----------------------------------------------------------------------------
# Demo / validation
# ----------------------------------------------------------------------------
if __name__ == "__main__":
    num_qubits = 10                               # 2**10 = 1024 amplitudes
    # Lane-only run (fused matmul), row-only gates, and mixed lane/row gates.
    targets = [[0], [2, 3], [5], [1, 4], [9, 7], [8], [6, 8], [9, 2]]

    key = jax.random.PRNGKey(0)
    key, skey = jax.random.split(key)
    gates = []
    for t in targets:
        key, gkey = jax.random.split(key)
        G = 2 ** len(t)
        gates.append(jax.random.normal(gkey, (G, G), dtype=jnp.float32))
    state = jax.random.normal(skey, tuple([2] * num_qubits), dtype=jnp.float32)

    out = quantum_circuit_forward(state, targets, gates, num_qubits, print_state=False)
    out = jax.block_until_ready(out)

    # Pure-NumPy (float64) reference with the exact torch semantics.
    ref = np.asarray(state, dtype=np.float64)
    dims = list(range(num_qubits))
    for target, gate in zip(targets, gates):
        target_axes = list(reversed([num_qubits - 1 - q for q in target]))
        perm = [i for i in dims if i not in target_axes] + target_axes
        inv = [0] * num_qubits
        for i, d in enumerate(perm):
            inv[d] = i
        ref = np.transpose(ref, perm).reshape((-1, 2 ** len(target)))
        ref = ref @ np.asarray(gate, dtype=np.float64).T
        ref = np.transpose(ref.reshape([2] * num_qubits), inv)

    out_np = np.asarray(out, dtype=np.float64)
    err = np.max(np.abs(out_np - ref)) / (np.max(np.abs(ref)) + 1e-30)
    assert err < 1e-4, f"max relative error {err}"

    # Exercise the traced (print_state) path -- per-step HBM trace via DMA --
    # without spamming stdout, and check it agrees with the fused path.
    out2d_t, trace = _simulate(state, targets, gates, num_qubits, record_trace=True)
    trace = jax.block_until_ready(trace)
    final = np.asarray(out2d_t, dtype=np.float64)
    last = np.asarray(trace[-1], dtype=np.float64)
    scale = np.max(np.abs(final)) + 1e-30
    assert np.max(np.abs(last - final)) / scale < 1e-5, "trace/final mismatch"
    err_t = np.max(np.abs(final.reshape([2] * num_qubits) - ref)) / (np.max(np.abs(ref)) + 1e-30)
    assert err_t < 1e-4, f"traced path max relative error {err_t}"

    print("KERNEL_OK")
</pallas_src>

<mosaic_0001>
module attributes {stable_mosaic.version = 11 : i64} {
  func.func @kernel(%arg0: memref<8x128xf32, #tpu.memory_space<vmem>>, %arg1: memref<128x128xf32, #tpu.memory_space<vmem>>, %arg2: memref<4x8x1xf32, #tpu.memory_space<vmem>>, %arg3: memref<2x8x1xf32, #tpu.memory_space<vmem>>, %arg4: memref<2x8x1xf32, #tpu.memory_space<vmem>>, %arg5: memref<4x2x1x128xf32, #tpu.memory_space<vmem>>, %arg6: memref<2x8x1xf32, #tpu.memory_space<vmem>>, %arg7: memref<4x2x1x128xf32, #tpu.memory_space<vmem>>, %arg8: memref<8x128xf32, #tpu.memory_space<vmem>>) attributes {dimension_semantics = [], scalar_prefetch = 0 : i64, scratch_operands = 0 : i64, tpu.core_type = #tpu.core_type<tc>} {
    %c0 = arith.constant 0 : index
    %c0_0 = arith.constant 0 : index
    %0 = vector.load %arg0[%c0, %c0_0] : memref<8x128xf32, #tpu.memory_space<vmem>>, vector<8x128xf32>
    %1 = tpu.iota {dimensions = array<i32: 1>} : vector<1x128xi32>
    %2 = tpu.iota {dimensions = array<i32: 0>} : vector<8x1xi32>
    %c2_i32 = arith.constant 2 : i32
    %3 = vector.broadcast %c2_i32 : i32 to vector<1x128xi32>
    %4 = arith.shrsi %1, %3 : vector<1x128xi32>
    %c1_i32 = arith.constant 1 : i32
    %5 = vector.broadcast %c1_i32 : i32 to vector<1x128xi32>
    %6 = arith.andi %4, %5 : vector<1x128xi32>
    %c0_i32 = arith.constant 0 : i32
    %7 = vector.broadcast %c0_i32 : i32 to vector<1x128xi32>
    %8 = arith.cmpi eq, %6, %7 : vector<1x128xi32>
    %c6_i32 = arith.constant 6 : i32
    %9 = vector.broadcast %c6_i32 : i32 to vector<1x128xi32>
    %10 = arith.shrsi %1, %9 : vector<1x128xi32>
    %c1_i32_1 = arith.constant 1 : i32
    %11 = vector.broadcast %c1_i32_1 : i32 to vector<1x128xi32>
    %12 = arith.andi %10, %11 : vector<1x128xi32>
    %c0_i32_2 = arith.constant 0 : i32
    %13 = vector.broadcast %c0_i32_2 : i32 to vector<1x128xi32>
    %14 = arith.cmpi eq, %12, %13 : vector<1x128xi32>
    %c0_i32_3 = arith.constant 0 : i32
    %15 = vector.broadcast %c0_i32_3 : i32 to vector<8x1xi32>
    %16 = arith.shrsi %2, %15 : vector<8x1xi32>
    %c1_i32_4 = arith.constant 1 : i32
    %17 = vector.broadcast %c1_i32_4 : i32 to vector<8x1xi32>
    %18 = arith.andi %16, %17 : vector<8x1xi32>
    %c0_i32_5 = arith.constant 0 : i32
    %19 = vector.broadcast %c0_i32_5 : i32 to vector<8x1xi32>
    %20 = arith.cmpi eq, %18, %19 : vector<8x1xi32>
    %c1_i32_6 = arith.constant 1 : i32
    %21 = vector.broadcast %c1_i32_6 : i32 to vector<8x1xi32>
    %22 = arith.shrsi %2, %21 : vector<8x1xi32>
    %c1_i32_7 = arith.constant 1 : i32
    %23 = vector.broadcast %c1_i32_7 : i32 to vector<8x1xi32>
    %24 = arith.andi %22, %23 : vector<8x1xi32>
    %c0_i32_8 = arith.constant 0 : i32
    %25 = vector.broadcast %c0_i32_8 : i32 to vector<8x1xi32>
    %26 = arith.cmpi eq, %24, %25 : vector<8x1xi32>
    %c2_i32_9 = arith.constant 2 : i32
    %27 = vector.broadcast %c2_i32_9 : i32 to vector<8x1xi32>
    %28 = arith.shrsi %2, %27 : vector<8x1xi32>
    %c1_i32_10 = arith.constant 1 : i32
    %29 = vector.broadcast %c1_i32_10 : i32 to vector<8x1xi32>
    %30 = arith.andi %28, %29 : vector<8x1xi32>
    %c0_i32_11 = arith.constant 0 : i32
    %31 = vector.broadcast %c0_i32_11 : i32 to vector<8x1xi32>
    %32 = arith.cmpi eq, %30, %31 : vector<8x1xi32>
    %c0_12 = arith.constant 0 : index
    %c0_13 = arith.constant 0 : index
    %33 = vector.load %arg1[%c0_12, %c0_13] : memref<128x128xf32, #tpu.memory_space<vmem>>, vector<128x128xf32>
    %cst = arith.constant dense<0.000000e+00> : vector<8x128xf32>
    %34 = tpu.matmul %0, %33, %cst {dimension_numbers = #tpu.dot_dimension_numbers<[1], [0], [0], [1], [0, 0, 1, 1], [], []>, precision = #tpu.contract_precision<fp32>} : vector<8x128xf32>, vector<128x128xf32>, vector<8x128xf32> -> vector<8x128xf32>
    %c0_14 = arith.constant 0 : index
    %c0_15 = arith.constant 0 : index
    %c0_16 = arith.constant 0 : index
    %35 = vector.load %arg2[%c0_14, %c0_15, %c0_16] : memref<4x8x1xf32, #tpu.memory_space<vmem>>, vector<1x8x1xf32>
    %36 = vector.shape_cast %35 : vector<1x8x1xf32> to vector<8x1xf32>
    %37 = vector.broadcast %36 : vector<8x1xf32> to vector<8x128xf32>
    %38 = arith.mulf %37, %34 : vector<8x128xf32>
    %c4_i32 = arith.constant 4 : i32
    %39 = tpu.dynamic_rotate %34 by %c4_i32 dim 0 : vector<8x128xf32>, i32 -> vector<8x128xf32>
    %c4_i32_17 = arith.constant 4 : i32
    %40 = tpu.dynamic_rotate %34 by %c4_i32_17 dim 0 : vector<8x128xf32>, i32 -> vector<8x128xf32>
    %41 = vector.shape_cast %32 : vector<8x1xi1> to vector<8x1xi1>
    %42 = vector.broadcast %41 : vector<8x1xi1> to vector<8x128xi1>
    %43 = arith.select %42, %39, %40 : vector<8x128xi1>, vector<8x128xf32>
    %c1 = arith.constant 1 : index
    %c0_18 = arith.constant 0 : index
    %c0_19 = arith.constant 0 : index
    %44 = vector.load %arg2[%c1, %c0_18, %c0_19] : memref<4x8x1xf32, #tpu.memory_space<vmem>>, vector<1x8x1xf32>
    %45 = vector.shape_cast %44 : vector<1x8x1xf32> to vector<8x1xf32>
    %46 = vector.broadcast %45 : vector<8x1xf32> to vector<8x128xf32>
    %47 = arith.mulf %46, %43 : vector<8x128xf32>
    %48 = arith.addf %38, %47 : vector<8x128xf32>
    %c7_i32 = arith.constant 7 : i32
    %49 = tpu.dynamic_rotate %43 by %c7_i32 dim 0 : vector<8x128xf32>, i32 -> vector<8x128xf32>
    %c1_i32_20 = arith.constant 1 : i32
    %50 = tpu.dynamic_rotate %43 by %c1_i32_20 dim 0 : vector<8x128xf32>, i32 -> vector<8x128xf32>
    %51 = vector.shape_cast %20 : vector<8x1xi1> to vector<8x1xi1>
    %52 = vector.broadcast %51 : vector<8x1xi1> to vector<8x128xi1>
    %53 = arith.select %52, %49, %50 : vector<8x128xi1>, vector<8x128xf32>
    %c2 = arith.constant 2 : index
    %c0_21 = arith.constant 0 : index
    %c0_22 = arith.constant 0 : index
    %54 = vector.load %arg2[%c2, %c0_21, %c0_22] : memref<4x8x1xf32, #tpu.memory_space<vmem>>, vector<1x8x1xf32>
    %55 = vector.shape_cast %54 : vector<1x8x1xf32> to vector<8x1xf32>
    %56 = vector.broadcast %55 : vector<8x1xf32> to vector<8x128xf32>
    %57 = arith.mulf %56, %53 : vector<8x128xf32>
    %58 = arith.addf %48, %57 : vector<8x128xf32>
    %c4_i32_23 = arith.constant 4 : i32
    %59 = tpu.dynamic_rotate %53 by %c4_i32_23 dim 0 : vector<8x128xf32>, i32 -> vector<8x128xf32>
    %c4_i32_24 = arith.constant 4 : i32
    %60 = tpu.dynamic_rotate %53 by %c4_i32_24 dim 0 : vector<8x128xf32>, i32 -> vector<8x128xf32>
    %61 = vector.shape_cast %32 : vector<8x1xi1> to vector<8x1xi1>
    %62 = vector.broadcast %61 : vector<8x1xi1> to vector<8x128xi1>
    %63 = arith.select %62, %59, %60 : vector<8x128xi1>, vector<8x128xf32>
    %c3 = arith.constant 3 : index
    %c0_25 = arith.constant 0 : index
    %c0_26 = arith.constant 0 : index
    %64 = vector.load %arg2[%c3, %c0_25, %c0_26] : memref<4x8x1xf32, #tpu.memory_space<vmem>>, vector<1x8x1xf32>
    %65 = vector.shape_cast %64 : vector<1x8x1xf32> to vector<8x1xf32>
    %66 = vector.broadcast %65 : vector<8x1xf32> to vector<8x128xf32>
    %67 = arith.mulf %66, %63 : vector<8x128xf32>
    %68 = arith.addf %58, %67 : vector<8x128xf32>
    %c0_27 = arith.constant 0 : index
    %c0_28 = arith.constant 0 : index
    %c0_29 = arith.constant 0 : index
    %69 = vector.load %arg3[%c0_27, %c0_28, %c0_29] : memref<2x8x1xf32, #tpu.memory_space<vmem>>, vector<1x8x1xf32>
    %70 = vector.shape_cast %69 : vector<1x8x1xf32> to vector<8x1xf32>
    %71 = vector.broadcast %70 : vector<8x1xf32> to vector<8x128xf32>
    %72 = arith.mulf %71, %68 : vector<8x128xf32>
    %c6_i32_30 = arith.constant 6 : i32
    %73 = tpu.dynamic_rotate %68 by %c6_i32_30 dim 0 : vector<8x128xf32>, i32 -> vector<8x128xf32>
    %c2_i32_31 = arith.constant 2 : i32
    %74 = tpu.dynamic_rotate %68 by %c2_i32_31 dim 0 : vector<8x128xf32>, i32 -> vector<8x128xf32>
    %75 = vector.shape_cast %26 : vector<8x1xi1> to vector<8x1xi1>
    %76 = vector.broadcast %75 : vector<8x1xi1> to vector<8x128xi1>
    %77 = arith.select %76, %73, %74 : vector<8x128xi1>, vector<8x128xf32>
    %c1_32 = arith.constant 1 : index
    %c0_33 = arith.constant 0 : index
    %c0_34 = arith.constant 0 : index
    %78 = vector.load %arg3[%c1_32, %c0_33, %c0_34] : memref<2x8x1xf32, #tpu.memory_space<vmem>>, vector<1x8x1xf32>
    %79 = vector.shape_cast %78 : vector<1x8x1xf32> to vector<8x1xf32>
    %80 = vector.broadcast %79 : vector<8x1xf32> to vector<8x128xf32>
    %81 = arith.mulf %80, %77 : vector<8x128xf32>
    %82 = arith.addf %72, %81 : vector<8x128xf32>
    %c0_35 = arith.constant 0 : index
    %c0_36 = arith.constant 0 : index
    %c0_37 = arith.constant 0 : index
    %83 = vector.load %arg4[%c0_35, %c0_36, %c0_37] : memref<2x8x1xf32, #tpu.memory_space<vmem>>, vector<1x8x1xf32>
    %84 = vector.shape_cast %83 : vector<1x8x1xf32> to vector<8x1xf32>
    %c1_38 = arith.constant 1 : index
    %c0_39 = arith.constant 0 : index
    %c0_40 = arith.constant 0 : index
    %85 = vector.load %arg4[%c1_38, %c0_39, %c0_40] : memref<2x8x1xf32, #tpu.memory_space<vmem>>, vector<1x8x1xf32>
    %86 = vector.shape_cast %85 : vector<1x8x1xf32> to vector<8x1xf32>
    %c0_41 = arith.constant 0 : index
    %c0_42 = arith.constant 0 : index
    %c0_43 = arith.constant 0 : index
    %c0_44 = arith.constant 0 : index
    %87 = vector.load %arg5[%c0_41, %c0_42, %c0_43, %c0_44] : memref<4x2x1x128xf32, #tpu.memory_space<vmem>>, vector<1x1x1x128xf32>
    %88 = vector.shape_cast %87 : vector<1x1x1x128xf32> to vector<1x128xf32>
    %89 = vector.broadcast %84 : vector<8x1xf32> to vector<8x128xf32>
    %90 = vector.broadcast %88 : vector<1x128xf32> to vector<8x128xf32>
    %91 = arith.mulf %89, %90 : vector<8x128xf32>
    %c0_45 = arith.constant 0 : index
    %c1_46 = arith.constant 1 : index
    %c0_47 = arith.constant 0 : index
    %c0_48 = arith.constant 0 : index
    %92 = vector.load %arg5[%c0_45, %c1_46, %c0_47, %c0_48] : memref<4x2x1x128xf32, #tpu.memory_space<vmem>>, vector<1x1x1x128xf32>
    %93 = vector.shape_cast %92 : vector<1x1x1x128xf32> to vector<1x128xf32>
    %94 = vector.broadcast %86 : vector<8x1xf32> to vector<8x128xf32>
    %95 = vector.broadcast %93 : vector<1x128xf32> to vector<8x128xf32>
    %96 = arith.mulf %94, %95 : vector<8x128xf32>
    %97 = arith.addf %91, %96 : vector<8x128xf32>
    %98 = arith.mulf %97, %82 : vector<8x128xf32>
    %c64_i32 = arith.constant 64 : i32
    %99 = tpu.dynamic_rotate %82 by %c64_i32 dim 1 : vector<8x128xf32>, i32 -> vector<8x128xf32>
    %c64_i32_49 = arith.constant 64 : i32
    %100 = tpu.dynamic_rotate %82 by %c64_i32_49 dim 1 : vector<8x128xf32>, i32 -> vector<8x128xf32>
    %101 = vector.shape_cast %14 : vector<1x128xi1> to vector<1x128xi1>
    %102 = vector.broadcast %101 : vector<1x128xi1> to vector<8x128xi1>
    %103 = arith.select %102, %99, %100 : vector<8x128xi1>, vector<8x128xf32>
    %c1_50 = arith.constant 1 : index
    %c0_51 = arith.constant 0 : index
    %c0_52 = arith.constant 0 : index
    %c0_53 = arith.constant 0 : index
    %104 = vector.load %arg5[%c1_50, %c0_51, %c0_52, %c0_53] : memref<4x2x1x128xf32, #tpu.memory_space<vmem>>, vector<1x1x1x128xf32>
    %105 = vector.shape_cast %104 : vector<1x1x1x128xf32> to vector<1x128xf32>
    %106 = vector.broadcast %84 : vector<8x1xf32> to vector<8x128xf32>
    %107 = vector.broadcast %105 : vector<1x128xf32> to vector<8x128xf32>
    %108 = arith.mulf %106, %107 : vector<8x128xf32>
    %c1_54 = arith.constant 1 : index
    %c1_55 = arith.constant 1 : index
    %c0_56 = arith.constant 0 : index
    %c0_57 = arith.constant 0 : index
    %109 = vector.load %arg5[%c1_54, %c1_55, %c0_56, %c0_57] : memref<4x2x1x128xf32, #tpu.memory_space<vmem>>, vector<1x1x1x128xf32>
    %110 = vector.shape_cast %109 : vector<1x1x1x128xf32> to vector<1x128xf32>
    %111 = vector.broadcast %86 : vector<8x1xf32> to vector<8x128xf32>
    %112 = vector.broadcast %110 : vector<1x128xf32> to vector<8x128xf32>
    %113 = arith.mulf %111, %112 : vector<8x128xf32>
    %114 = arith.addf %108, %113 : vector<8x128xf32>
    %115 = arith.mulf %114, %103 : vector<8x128xf32>
    %116 = arith.addf %98, %115 : vector<8x128xf32>
    %c6_i32_58 = arith.constant 6 : i32
    %117 = tpu.dynamic_rotate %103 by %c6_i32_58 dim 0 : vector<8x128xf32>, i32 -> vector<8x128xf32>
    %c2_i32_59 = arith.constant 2 : i32
    %118 = tpu.dynamic_rotate %103 by %c2_i32_59 dim 0 : vector<8x128xf32>, i32 -> vector<8x128xf32>
    %119 = vector.shape_cast %26 : vector<8x1xi1> to vector<8x1xi1>
    %120 = vector.broadcast %119 : vector<8x1xi1> to vector<8x128xi1>
    %121 = arith.select %120, %117, %118 : vector<8x128xi1>, vector<8x128xf32>
    %c2_60 = arith.constant 2 : index
    %c0_61 = arith.constant 0 : index
    %c0_62 = arith.constant 0 : index
    %c0_63 = arith.constant 0 : index
    %122 = vector.load %arg5[%c2_60, %c0_61, %c0_62, %c0_63] : memref<4x2x1x128xf32, #tpu.memory_space<vmem>>, vector<1x1x1x128xf32>
    %123 = vector.shape_cast %122 : vector<1x1x1x128xf32> to vector<1x128xf32>
    %124 = vector.broadcast %84 : vector<8x1xf32> to vector<8x128xf32>
    %125 = vector.broadcast %123 : vector<1x128xf32> to vector<8x128xf32>
    %126 = arith.mulf %124, %125 : vector<8x128xf32>
    %c2_64 = arith.constant 2 : index
    %c1_65 = arith.constant 1 : index
    %c0_66 = arith.constant 0 : index
    %c0_67 = arith.constant 0 : index
    %127 = vector.load %arg5[%c2_64, %c1_65, %c0_66, %c0_67] : memref<4x2x1x128xf32, #tpu.memory_space<vmem>>, vector<1x1x1x128xf32>
    %128 = vector.shape_cast %127 : vector<1x1x1x128xf32> to vector<1x128xf32>
    %129 = vector.broadcast %86 : vector<8x1xf32> to vector<8x128xf32>
    %130 = vector.broadcast %128 : vector<1x128xf32> to vector<8x128xf32>
    %131 = arith.mulf %129, %130 : vector<8x128xf32>
    %132 = arith.addf %126, %131 : vector<8x128xf32>
    %133 = arith.mulf %132, %121 : vector<8x128xf32>
    %134 = arith.addf %116, %133 : vector<8x128xf32>
    %c64_i32_68 = arith.constant 64 : i32
    %135 = tpu.dynamic_rotate %121 by %c64_i32_68 dim 1 : vector<8x128xf32>, i32 -> vector<8x128xf32>
    %c64_i32_69 = arith.constant 64 : i32
    %136 = tpu.dynamic_rotate %121 by %c64_i32_69 dim 1 : vector<8x128xf32>, i32 -> vector<8x128xf32>
    %137 = vector.shape_cast %14 : vector<1x128xi1> to vector<1x128xi1>
    %138 = vector.broadcast %137 : vector<1x128xi1> to vector<8x128xi1>
    %139 = arith.select %138, %135, %136 : vector<8x128xi1>, vector<8x128xf32>
    %c3_70 = arith.constant 3 : index
    %c0_71 = arith.constant 0 : index
    %c0_72 = arith.constant 0 : index
    %c0_73 = arith.constant 0 : index
    %140 = vector.load %arg5[%c3_70, %c0_71, %c0_72, %c0_73] : memref<4x2x1x128xf32, #tpu.memory_space<vmem>>, vector<1x1x1x128xf32>
    %141 = vector.shape_cast %140 : vector<1x1x1x128xf32> to vector<1x128xf32>
    %142 = vector.broadcast %84 : vector<8x1xf32> to vector<8x128xf32>
    %143 = vector.broadcast %141 : vector<1x128xf32> to vector<8x128xf32>
    %144 = arith.mulf %142, %143 : vector<8x128xf32>
    %c3_74 = arith.constant 3 : index
    %c1_75 = arith.constant 1 : index
    %c0_76 = arith.constant 0 : index
    %c0_77 = arith.constant 0 : index
    %145 = vector.load %arg5[%c3_74, %c1_75, %c0_76, %c0_77] : memref<4x2x1x128xf32, #tpu.memory_space<vmem>>, vector<1x1x1x128xf32>
    %146 = vector.shape_cast %145 : vector<1x1x1x128xf32> to vector<1x128xf32>
    %147 = vector.broadcast %86 : vector<8x1xf32> to vector<8x128xf32>
    %148 = vector.broadcast %146 : vector<1x128xf32> to vector<8x128xf32>
    %149 = arith.mulf %147, %148 : vector<8x128xf32>
    %150 = arith.addf %144, %149 : vector<8x128xf32>
    %151 = arith.mulf %150, %139 : vector<8x128xf32>
    %152 = arith.addf %134, %151 : vector<8x128xf32>
    %c0_78 = arith.constant 0 : index
    %c0_79 = arith.constant 0 : index
    %c0_80 = arith.constant 0 : index
    %153 = vector.load %arg6[%c0_78, %c0_79, %c0_80] : memref<2x8x1xf32, #tpu.memory_space<vmem>>, vector<1x8x1xf32>
    %154 = vector.shape_cast %153 : vector<1x8x1xf32> to vector<8x1xf32>
    %c1_81 = arith.constant 1 : index
    %c0_82 = arith.constant 0 : index
    %c0_83 = arith.constant 0 : index
    %155 = vector.load %arg6[%c1_81, %c0_82, %c0_83] : memref<2x8x1xf32, #tpu.memory_space<vmem>>, vector<1x8x1xf32>
    %156 = vector.shape_cast %155 : vector<1x8x1xf32> to vector<8x1xf32>
    %c0_84 = arith.constant 0 : index
    %c0_85 = arith.constant 0 : index
    %c0_86 = arith.constant 0 : index
    %c0_87 = arith.constant 0 : index
    %157 = vector.load %arg7[%c0_84, %c0_85, %c0_86, %c0_87] : memref<4x2x1x128xf32, #tpu.memory_space<vmem>>, vector<1x1x1x128xf32>
    %158 = vector.shape_cast %157 : vector<1x1x1x128xf32> to vector<1x128xf32>
    %159 = vector.broadcast %154 : vector<8x1xf32> to vector<8x128xf32>
    %160 = vector.broadcast %158 : vector<1x128xf32> to vector<8x128xf32>
    %161 = arith.mulf %159, %160 : vector<8x128xf32>
    %c0_88 = arith.constant 0 : index
    %c1_89 = arith.constant 1 : index
    %c0_90 = arith.constant 0 : index
    %c0_91 = arith.constant 0 : index
    %162 = vector.load %arg7[%c0_88, %c1_89, %c0_90, %c0_91] : memref<4x2x1x128xf32, #tpu.memory_space<vmem>>, vector<1x1x1x128xf32>
    %163 = vector.shape_cast %162 : vector<1x1x1x128xf32> to vector<1x128xf32>
    %164 = vector.broadcast %156 : vector<8x1xf32> to vector<8x128xf32>
    %165 = vector.broadcast %163 : vector<1x128xf32> to vector<8x128xf32>
    %166 = arith.mulf %164, %165 : vector<8x128xf32>
    %167 = arith.addf %161, %166 : vector<8x128xf32>
    %168 = arith.mulf %167, %152 : vector<8x128xf32>
    %c4_i32_92 = arith.constant 4 : i32
    %169 = tpu.dynamic_rotate %152 by %c4_i32_92 dim 0 : vector<8x128xf32>, i32 -> vector<8x128xf32>
    %c4_i32_93 = arith.constant 4 : i32
    %170 = tpu.dynamic_rotate %152 by %c4_i32_93 dim 0 : vector<8x128xf32>, i32 -> vector<8x128xf32>
    %171 = vector.shape_cast %32 : vector<8x1xi1> to vector<8x1xi1>
    %172 = vector.broadcast %171 : vector<8x1xi1> to vector<8x128xi1>
    %173 = arith.select %172, %169, %170 : vector<8x128xi1>, vector<8x128xf32>
    %c1_94 = arith.constant 1 : index
    %c0_95 = arith.constant 0 : index
    %c0_96 = arith.constant 0 : index
    %c0_97 = arith.constant 0 : index
    %174 = vector.load %arg7[%c1_94, %c0_95, %c0_96, %c0_97] : memref<4x2x1x128xf32, #tpu.memory_space<vmem>>, vector<1x1x1x128xf32>
    %175 = vector.shape_cast %174 : vector<1x1x1x128xf32> to vector<1x128xf32>
    %176 = vector.broadcast %154 : vector<8x1xf32> to vector<8x128xf32>
    %177 = vector.broadcast %175 : vector<1x128xf32> to vector<8x128xf32>
    %178 = arith.mulf %176, %177 : vector<8x128xf32>
    %c1_98 = arith.constant 1 : index
    %c1_99 = arith.constant 1 : index
    %c0_100 = arith.constant 0 : index
    %c0_101 = arith.constant 0 : index
    %179 = vector.load %arg7[%c1_98, %c1_99, %c0_100, %c0_101] : memref<4x2x1x128xf32, #tpu.memory_space<vmem>>, vector<1x1x1x128xf32>
    %180 = vector.shape_cast %179 : vector<1x1x1x128xf32> to vector<1x128xf32>
    %181 = vector.broadcast %156 : vector<8x1xf32> to vector<8x128xf32>
    %182 = vector.broadcast %180 : vector<1x128xf32> to vector<8x128xf32>
    %183 = arith.mulf %181, %182 : vector<8x128xf32>
    %184 = arith.addf %178, %183 : vector<8x128xf32>
    %185 = arith.mulf %184, %173 : vector<8x128xf32>
    %186 = arith.addf %168, %185 : vector<8x128xf32>
    %c124_i32 = arith.constant 124 : i32
    %187 = tpu.dynamic_rotate %173 by %c124_i32 dim 1 : vector<8x128xf32>, i32 -> vector<8x128xf32>
    %c4_i32_102 = arith.constant 4 : i32
    %188 = tpu.dynamic_rotate %173 by %c4_i32_102 dim 1 : vector<8x128xf32>, i32 -> vector<8x128xf32>
    %189 = vector.shape_cast %8 : vector<1x128xi1> to vector<1x128xi1>
    %190 = vector.broadcast %189 : vector<1x128xi1> to vector<8x128xi1>
    %191 = arith.select %190, %187, %188 : vector<8x128xi1>, vector<8x128xf32>
    %c2_103 = arith.constant 2 : index
    %c0_104 = arith.constant 0 : index
    %c0_105 = arith.constant 0 : index
    %c0_106 = arith.constant 0 : index
    %192 = vector.load %arg7[%c2_103, %c0_104, %c0_105, %c0_106] : memref<4x2x1x128xf32, #tpu.memory_space<vmem>>, vector<1x1x1x128xf32>
    %193 = vector.shape_cast %192 : vector<1x1x1x128xf32> to vector<1x128xf32>
    %194 = vector.broadcast %154 : vector<8x1xf32> to vector<8x128xf32>
    %195 = vector.broadcast %193 : vector<1x128xf32> to vector<8x128xf32>
    %196 = arith.mulf %194, %195 : vector<8x128xf32>
    %c2_107 = arith.constant 2 : index
    %c1_108 = arith.constant 1 : index
    %c0_109 = arith.constant 0 : index
    %c0_110 = arith.constant 0 : index
    %197 = vector.load %arg7[%c2_107, %c1_108, %c0_109, %c0_110] : memref<4x2x1x128xf32, #tpu.memory_space<vmem>>, vector<1x1x1x128xf32>
    %198 = vector.shape_cast %197 : vector<1x1x1x128xf32> to vector<1x128xf32>
    %199 = vector.broadcast %156 : vector<8x1xf32> to vector<8x128xf32>
    %200 = vector.broadcast %198 : vector<1x128xf32> to vector<8x128xf32>
    %201 = arith.mulf %199, %200 : vector<8x128xf32>
    %202 = arith.addf %196, %201 : vector<8x128xf32>
    %203 = arith.mulf %202, %191 : vector<8x128xf32>
    %204 = arith.addf %186, %203 : vector<8x128xf32>
    %c4_i32_111 = arith.constant 4 : i32
    %205 = tpu.dynamic_rotate %191 by %c4_i32_111 dim 0 : vector<8x128xf32>, i32 -> vector<8x128xf32>
    %c4_i32_112 = arith.constant 4 : i32
    %206 = tpu.dynamic_rotate %191 by %c4_i32_112 dim 0 : vector<8x128xf32>, i32 -> vector<8x128xf32>
    %207 = vector.shape_cast %32 : vector<8x1xi1> to vector<8x1xi1>
    %208 = vector.broadcast %207 : vector<8x1xi1> to vector<8x128xi1>
    %209 = arith.select %208, %205, %206 : vector<8x128xi1>, vector<8x128xf32>
    %c3_113 = arith.constant 3 : index
    %c0_114 = arith.constant 0 : index
    %c0_115 = arith.constant 0 : index
    %c0_116 = arith.constant 0 : index
    %210 = vector.load %arg7[%c3_113, %c0_114, %c0_115, %c0_116] : memref<4x2x1x128xf32, #tpu.memory_space<vmem>>, vector<1x1x1x128xf32>
    %211 = vector.shape_cast %210 : vector<1x1x1x128xf32> to vector<1x128xf32>
    %212 = vector.broadcast %154 : vector<8x1xf32> to vector<8x128xf32>
    %213 = vector.broadcast %211 : vector<1x128xf32> to vector<8x128xf32>
    %214 = arith.mulf %212, %213 : vector<8x128xf32>
    %c3_117 = arith.constant 3 : index
    %c1_118 = arith.constant 1 : index
    %c0_119 = arith.constant 0 : index
    %c0_120 = arith.constant 0 : index
    %215 = vector.load %arg7[%c3_117, %c1_118, %c0_119, %c0_120] : memref<4x2x1x128xf32, #tpu.memory_space<vmem>>, vector<1x1x1x128xf32>
    %216 = vector.shape_cast %215 : vector<1x1x1x128xf32> to vector<1x128xf32>
    %217 = vector.broadcast %156 : vector<8x1xf32> to vector<8x128xf32>
    %218 = vector.broadcast %216 : vector<1x128xf32> to vector<8x128xf32>
    %219 = arith.mulf %217, %218 : vector<8x128xf32>
    %220 = arith.addf %214, %219 : vector<8x128xf32>
    %221 = arith.mulf %220, %209 : vector<8x128xf32>
    %222 = arith.addf %204, %221 : vector<8x128xf32>
    %c0_121 = arith.constant 0 : index
    %c0_122 = arith.constant 0 : index
    %223 = vector.load %arg8[%c0_121, %c0_122] : memref<8x128xf32, #tpu.memory_space<vmem>>, vector<8x128xf32>
    tpu.vector_store %arg8[%c0_121, %c0_122], %222 {strides = array<i32>} : memref<8x128xf32, #tpu.memory_space<vmem>>, vector<8x128xf32>,
    return
  }
}

</mosaic_0001>

<bundles_post_ra>
// kernel: tpu_custom_call.1
= control target key start
LH: loop header
LB: loop body
LE: loop exit
PB: predicated region body
PF: predicated region fallthrough
CT: control target
= control target key end

     0   :  { %13 = vsyncpa [#allocation3], 0  ;;  %s2016_s0 = inlined_call_operand.vmem [shape: f32[8,128], index: 0, kind: input, shape index: {}]   ;;  %s2017_s1 = inlined_call_operand.hbm [shape: f32[128,128], index: 1, kind: input, shape index: {}]   ;;  %s2018_s2 = inlined_call_operand.vmem [shape: f32[4,8,1], index: 2, kind: input, shape index: {}]   ;;  %s2019_s3 = inlined_call_operand.vmem [shape: f32[2,8,1], index: 3, kind: input, shape index: {}]   ;;  %s2020_s4 = inlined_call_operand.vmem [shape: f32[2,8,1], index: 4, kind: input, shape index: {}]   ;;  %s2021_s5 = inlined_call_operand.vmem [shape: f32[4,2,1,128], index: 5, kind: input, shape index: {}]   ;;  %s2022_s6 = inlined_call_operand.vmem [shape: f32[2,8,1], index: 6, kind: input, shape index: {}]   ;;  %s2023_s7 = inlined_call_operand.vmem [shape: f32[4,2,1,128], index: 7, kind: input, shape index: {}]   ;;  %s2024_s8 = inlined_call_operand.hbm [shape: f32[8,128], index: 8, kind: output, shape index: {}]  }
   0x1   :  { %14 = vsyncpa [#allocation4], 0  ;;  %s1560_s27 = smov [#allocation2]   ;;  %s1512_s9 = scalar_lea.hbm %s2017_s1, 2048 }
   0x2   :  { %s22_s28 = sshll.u32 %s1560_s27, 4  ;;  %p1513_p0 = scmp.ne.s32.totalorder %s2017_s1, %s1512_s9  ;;  %s23_s28 = int_to_ptr.vmem [resolvable:$true] %s22_s28 }
   0x3   :  { %p1516_p1 = scmp.lt.u32.totalorder %s1512_s9, %s2017_s1 }
   0x5   :  { %p1518_p2 = pnand %p1516_p1, %p1513_p0 }
   0x7   :  { %1521 = shalt.err (!%p1518_p2)
}
   0x8   :  { %s1522_s14 = scalar_lea.vmem %s23_s28, 2048  ;;  %p1527_p4 = scmp.lt.s32.totalorder %s23_s28, %s23_s28 }
   0x9   :  { %p1523_p3 = scmp.ne.s32.totalorder %s23_s28, %s1522_s14  ;;  %p1528_p5 = scmp.lt.s32.totalorder %s1522_s14, %s1522_s14 }
   0xb   :  { %p1529_p6 = por %p1528_p5, %p1527_p4 }
   0xd   :  { %p1530_p7 = pnand %p1529_p6, %p1523_p3 }
   0xf   :  { %1533 = shalt.err (!%p1530_p7)
}
  0x10   :  { %s1561_s15 = smov 128   ;;  %s1562_s16 = smov 8  }
  0x11   :  { %28 = dma.hbm_to_vmem [thread:$0]  %s2017_s1, 2048, %s23_s28, [#allocation3], %s1561_s15, %s1561_s15, %s1562_s16  }
  0x12   :  { %1556 = dma.done.wait [#allocation3], 2048  }
  0x13   :  { %1557 = vsyncadd [#allocation3], 4294965248  ;;  %v1563_v0 = vmov 0.0|0.0   ;;  %vm1564_vm0 = vmmov 0   ;;  %v1565_v1 = vmov 0.0   ;;  %v1566_v2 = vmov 0  }
  0x14   :  { %1346 = vmatprep.subr.bf16.mxu1 %v1563_v0  ;;  %1418 = vmatprep.subr.bf16.mxu0 %v1563_v0  ;;  %v57_v3 = vld [vmem:[#allocation2] sm:$0xff]  ;;  %v58_v4 = vld [vmem:[#allocation2 + $0x8] sm:$0xff]  ;;  %v1634_v5 = vld [vmem:[#allocation2 + $0x10] sm:$0xff]  ;;  %s1568_s28 = smov 4   ;;  %s1569_s29 = smov 124  }
  0x15   :  { %1168 = vmatprep.mubr.msk.f32.mxu1 %vm1564_vm0, %v1565_v1  ;;  %1273 = vmatprep.mubr.msk.f32.mxu0 %vm1564_vm0, %v1565_v1  ;;  %v74_v6 = vand.u32 4294901760, %v57_v3  ;;  %v77_v7 = vand.u32 4294901760, %v58_v4  ;;  %v60_v8 = vld [vmem:[#allocation2 + $0x18] sm:$0xff]  ;;  %v80_v9 = vand.u32 4294901760, %v1634_v5  ;;  %v1637_v11 = vld [vmem:[#allocation2 + $0x20] sm:$0xff]  ;;  %v1639_v12 = vld [vmem:[#allocation2 + $0x28] sm:$0xff] }
  0x16   :  { %1511 = vset.pattern.permute.xlu1 %v1566_v2  ;;  %1510 = vset.pattern.permute.xlu0 %v1566_v2  ;;  %v83_v10 = vand.u32 4294901760, %v60_v8  ;;  %v86_v15 = vand.u32 4294901760, %v1637_v11  ;;  %v89_v16 = vand.u32 4294901760, %v1639_v12  ;;  %v999_v17 = vld [vmem:[%s2018_s2 + $0x10] sm:$0xff]  ;;  %v1656_v19 = vld [vmem:[#allocation2 + $0x38] sm:$0xff]  ;;  %v714_v20 = vld [vmem:[%s2018_s2] sm:$0xff] }
  0x17   :  { %v1641_v13 = vpack.c.bf16 %v77_v7, %v74_v6  ;;  %v1654_v18 = vld [vmem:[#allocation2 + $0x30] sm:$0xff]  ;;  %740 = vperm.xlu1 %1511, %v999_v17   ;;  %717 = vperm.xlu0 %1510, %v714_v20   ;;  %v1000_v21 = vld [vmem:[%s2018_s2 + $0x18] sm:$0xff]  ;;  %v95_v24 = vand.u32 4294901760, %v1656_v19  ;;  %v998_v25 = vld [vmem:[%s2018_s2 + $0x8] sm:$0xff]  ;;  %v1708_v36 = vsub.f32 %v57_v3, %v74_v6  ;;  %v1715_v39 = vsub.f32 %v58_v4, %v77_v7  ;;  %s1570_s19 = smov [#allocation5]  }
  0x18   :  { %v1645_v14 = vpack.c.bf16 %v83_v10, %v80_v9  ;;  %v1670_v22 = vpack.c.bf16 %v89_v16, %v86_v15  ;;  %v92_v23 = vand.u32 4294901760, %v1654_v18  ;;  %v1679_v26 = vld [vmem:[#allocation2 + $0x40] sm:$0xff]  ;;  %v1681_v27 = vld [vmem:[#allocation2 + $0x48] sm:$0xff]  ;;  %v1704_v34 = vld [vmem:[#allocation2 + $0x50] sm:$0xff]  ;;  %v1734_v45 = vsub.f32 %v1634_v5, %v80_v9  ;;  %s989_s20 = sshll.u32 %s1570_s19, 4  ;;  %s990_s20 = int_to_ptr.vmem [resolvable:$true] %s989_s20 }
  0x19   :  { %1348 = vmatpush3.bf16.msra.mxu1 %v1641_v13  ;;  %1420 = vmatpush3.bf16.msra.mxu0 %v1641_v13  ;;  %v1001_v28 = vld [vmem:[%s2019_s3 + $0x8] sm:$0xff]  ;;  %v98_v30 = vand.u32 4294901760, %v1679_v26  ;;  %v101_v31 = vand.u32 4294901760, %v1681_v27  ;;  %v44_v32 = vld [vmem:[%s2016_s0] sm:$0xff]  ;;  %v1706_v35 = vld [vmem:[#allocation2 + $0x58] sm:$0xff]  ;;  %v104_v41 = vand.u32 4294901760, %v1704_v34  ;;  %v1736_v46 = vsub.f32 %v60_v8, %v83_v10  ;;  %p1539_p9 = scmp.lt.s32.totalorder %s990_s20, %s990_s20 }
  0x1a   :  { %1349 = vmatprep.subr.bf16.mxu1 %v1563_v0  ;;  %1421 = vmatprep.subr.bf16.mxu0 %v1563_v0  ;;  %v1692_v29 = vpack.c.bf16 %v95_v24, %v92_v23  ;;  %v755_v33 = vld [vmem:[%s2019_s3] sm:$0xff]  ;;  %v1710_v37 = vand.u32 4294901760, %v44_v32  ;;  %v107_v42 = vand.u32 4294901760, %v1706_v35  ;;  %v1731_v44 = vld [vmem:[#allocation2 + $0x68] sm:$0xff]  ;;  %v1751_v51 = vld [vmem:[#allocation2 + $0x70] sm:$0xff]  ;;  %v167_v53 = vand.u32 4294901760, %v1708_v36 }
  0x1b   :  { %750 = vperm.xlu1 %1511, %v1000_v21   ;;  %726 = vperm.xlu0 %1510, %v998_v25   ;;  %v776_v38 = vld [vmem:[%s2020_s4] sm:$0xff]  ;;  %v1723_v40 = vpack.c.bf16 %v101_v31, %v98_v30  ;;  %v113_v50 = vand.u32 4294901760, %v1731_v44  ;;  %v1753_v52 = vld [vmem:[#allocation2 + $0x78] sm:$0xff]  ;;  %v174_v54 = vand.u32 4294901760, %v1715_v39  ;;  %v1762_v55 = vsub.f32 %v1637_v11, %v86_v15  ;;  %s1567_s3 = smov 64   ;;  %s1534_s21 = scalar_lea.vmem %s990_s20, 128 }
  0x1c   :  { %v1727_v43 = vld [vmem:[#allocation2 + $0x60] sm:$0xff]  ;;  %v1740_v48 = vsub.f32 %v44_v32, %v1710_v37  ;;  %v1748_v49 = vpack.c.bf16 %v107_v42, %v104_v41  ;;  %v1767_v56 = vsub.f32 %v1639_v12, %v89_v16  ;;  %v116_v57 = vand.u32 4294901760, %v1751_v51  ;;  %p1535_p8 = scmp.ne.s32.totalorder %s990_s20, %s1534_s21  ;;  %p1540_p10 = scmp.lt.s32.totalorder %s1534_s21, %s1534_s21 }
  0x1d   :  { %1351 = vmatpush3.bf16.msra.mxu1 %v1645_v14  ;;  %1423 = vmatpush3.bf16.msra.mxu0 %v1645_v14  ;;  %v110_v47 = vand.u32 4294901760, %v1727_v43  ;;  %v119_v58 = vand.u32 4294901760, %v1753_v52  ;;  %v181_v60 = vand.u32 4294901760, %v1734_v45  ;;  %v168_v62 = vsub.f32 %v1708_v36, %v167_v53 }
  0x1e   :  { %1352 = vmatprep.subr.bf16.mxu1 %v1563_v0  ;;  %1424 = vmatprep.subr.bf16.mxu0 %v1563_v0  ;;  %v156_v59 = vand.u32 4294901760, %v1740_v48  ;;  %v175_v63 = vsub.f32 %v1715_v39, %v174_v54  ;;  %v188_v2 = vand.u32 4294901760, %v1736_v46  ;;  %v1789_v3 = vsub.f32 %v1654_v18, %v92_v23  ;;  %p1541_p11 = por %p1540_p10, %p1539_p9 }
  0x1f   :  { %771 = vperm.xlu1 %1511, %v1001_v28   ;;  %758 = vperm.xlu0 %1510, %v755_v33   ;;  %v1779_v61 = vpack.c.bf16 %v113_v50, %v110_v47  ;;  %v1794_v4 = vsub.f32 %v1656_v19, %v95_v24  ;;  %v182_v6 = vsub.f32 %v1734_v45, %v181_v60  ;;  %v195_v7 = vand.u32 4294901760, %v1762_v55 }
  0x20   :  { %v157_v5 = vsub.f32 %v1740_v48, %v156_v59  ;;  %v202_v8 = vand.u32 4294901760, %v1767_v56  ;;  %v1806_v9 = vpack.c.bf16 %v119_v58, %v116_v57  ;;  %v169_v10 = vand.u32 4294901760, %v168_v62  ;;  %p1542_p12 = pnand %p1541_p11, %p1535_p8 }
  0x21   :  { %1354 = vmatpush3.bf16.msra.mxu1 %v1670_v22  ;;  %1426 = vmatpush3.bf16.msra.mxu0 %v1670_v22  ;;  %v176_v11 = vand.u32 4294901760, %v175_v63  ;;  %v189_v12 = vsub.f32 %v1736_v46, %v188_v2  ;;  %v1814_v15 = vsub.f32 %v1679_v26, %v98_v30  ;;  %v1819_v16 = vsub.f32 %v1681_v27, %v101_v31 }
  0x22   :  { %1355 = vmatprep.subr.bf16.mxu1 %v1563_v0  ;;  %1427 = vmatprep.subr.bf16.mxu0 %v1563_v0  ;;  %v1443_v17 = vpack.c.bf16 %v174_v54, %v167_v53  ;;  %v158_v18 = vand.u32 4294901760, %v157_v5  ;;  %v183_v19 = vand.u32 4294901760, %v182_v6  ;;  %v196_v20 = vsub.f32 %v1762_v55, %v195_v7 }
  0x23   :  { %782 = vperm.xlu1 %1511, %v776_v38   ;;  %v203_v21 = vsub.f32 %v1767_v56, %v202_v8  ;;  %v1371_v23 = vpack.c.bf16 %v176_v11, %v169_v10  ;;  %v190_v24 = vand.u32 4294901760, %v189_v12  ;;  %v209_v25 = vand.u32 4294901760, %v1789_v3 }
  0x24   :  { %v216_v26 = vand.u32 4294901760, %v1794_v4  ;;  %v1832_v27 = vsub.f32 %v1704_v34, %v104_v41  ;;  %v1837_v28 = vsub.f32 %v1706_v35, %v107_v42  ;;  %v1446_v30 = vpack.c.bf16 %v188_v2, %v181_v60 }
  0x25   :  { %1357 = vmatpush3.bf16.msra.mxu1 %v1692_v29  ;;  %1429 = vmatpush3.bf16.msra.mxu0 %v1692_v29  ;;  %v197_v31 = vand.u32 4294901760, %v196_v20  ;;  %v204_v32 = vand.u32 4294901760, %v203_v21  ;;  %v223_v33 = vand.u32 4294901760, %v1814_v15  ;;  %v1374_v38 = vpack.c.bf16 %v190_v24, %v183_v19 }
  0x26   :  { %1358 = vmatprep.subr.bf16.mxu1 %v1563_v0  ;;  %1430 = vmatprep.subr.bf16.mxu0 %v1563_v0  ;;  %v210_v53 = vsub.f32 %v1789_v3, %v209_v25  ;;  %v217_v34 = vsub.f32 %v1794_v4, %v216_v26  ;;  %v230_v41 = vand.u32 4294901760, %v1819_v16  ;;  %v1848_v35 = vsub.f32 %v1727_v43, %v110_v47 }
  0x27   :  { %v1853_v42 = vsub.f32 %v1731_v44, %v113_v50  ;;  %v1377_v54 = vpack.c.bf16 %v204_v32, %v197_v31  ;;  %v224_v60 = vsub.f32 %v1814_v15, %v223_v33  ;;  %v237_v62 = vand.u32 4294901760, %v1832_v27 }
  0x28   :  { %v211_v43 = vand.u32 4294901760, %v210_v53  ;;  %v218_v47 = vand.u32 4294901760, %v217_v34  ;;  %v231_v63 = vsub.f32 %v1819_v16, %v230_v41  ;;  %v244_v44 = vand.u32 4294901760, %v1837_v28 }
  0x29   :  { %1360 = vmatpush3.bf16.msra.mxu1 %v1723_v40  ;;  %1432 = vmatpush3.bf16.msra.mxu0 %v1723_v40  ;;  %v1868_v50 = vsub.f32 %v1751_v51, %v116_v57  ;;  %v1873_v2 = vsub.f32 %v1753_v52, %v119_v58  ;;  %v1452_v5 = vpack.c.bf16 %v216_v26, %v209_v25  ;;  %v225_v6 = vand.u32 4294901760, %v224_v60 }
  0x2a   :  { %1361 = vmatprep.subr.bf16.mxu1 %v1563_v0  ;;  %1433 = vmatprep.subr.bf16.mxu0 %v1563_v0  ;;  %v1380_v10 = vpack.c.bf16 %v218_v47, %v211_v43  ;;  %v232_v11 = vand.u32 4294901760, %v231_v63  ;;  %v245_v12 = vsub.f32 %v1837_v28, %v244_v44  ;;  %v258_v51 = vand.u32 4294901760, %v1853_v42 }
  0x2b   :  { %v1455_v52 = vpack.c.bf16 %v230_v41, %v223_v33  ;;  %v272_v21 = vand.u32 4294901760, %v1873_v2 }
  0x2c   :  { %v246_v19 = vand.u32 4294901760, %v245_v12  ;;  %v259_v20 = vsub.f32 %v1853_v42, %v258_v51  ;;  %v1002_v12 = vld [vmem:[%s2020_s4 + $0x8] sm:$0xff] }
  0x2d   :  { %1363 = vmatpush3.bf16.msra.mxu1 %v1748_v49  ;;  %1435 = vmatpush3.bf16.msra.mxu0 %v1748_v49  ;;  %v273_v31 = vsub.f32 %v1873_v2, %v272_v21 }
  0x2e   :  { %1364 = vmatprep.subr.bf16.mxu1 %v1563_v0  ;;  %1436 = vmatprep.subr.bf16.mxu0 %v1563_v0  ;;  %v260_v26 = vand.u32 4294901760, %v259_v20  ;;  %v1007_v20 = vld [vmem:[%s2021_s5 + $0x2] ss:$0 sm:$0xff] }
  0x2f   :  { %v274_v53 = vand.u32 4294901760, %v273_v31 }
  0x31   :  { %1366 = vmatpush3.bf16.msra.mxu1 %v1779_v61  ;;  %1438 = vmatpush3.bf16.msra.mxu0 %v1779_v61 }
  0x32   :  { %1367 = vmatprep.subr.bf16.mxu1 %v1563_v0  ;;  %1439 = vmatprep.subr.bf16.mxu0 %v1563_v0 }
  0x35   :  { %1369 = vmatpush3.bf16.msra.mxu1 %v1806_v9  ;;  %1441 = vmatpush3.bf16.msra.mxu0 %v1806_v9 }
  0x36   :  { %1370 = vmatprep.subr.bf16.mxu1 %v1563_v0  ;;  %1442 = vmatprep.subr.bf16.mxu0 %v1563_v0 }
  0x38   :  { %1169 = vmatmul.mubr.f32.vlgmr.msra.gmra.mrb[0].mxu1 %v158_v18  ;;  %1274 = vmatmul.mubr.f32.vlgmr.msra.gmra.mrb[0].mxu0 %v156_v59  ;;  %v1449_v59 = vpack.c.bf16 %v202_v8, %v195_v7  ;;  %v238_v7 = vsub.f32 %v1832_v27, %v237_v62  ;;  %v251_v8 = vand.u32 4294901760, %v1848_v35  ;;  %v1383_v18 = vpack.c.bf16 %v232_v11, %v225_v6 }
  0x39   :  { %1372 = vmatpush3.bf16.msra.mxu1 %v1371_v23  ;;  %1444 = vmatpush3.bf16.msra.mxu0 %v1443_v17  ;;  %v265_v17 = vand.u32 4294901760, %v1868_v50  ;;  %v1458_v23 = vpack.c.bf16 %v244_v44, %v237_v62 }
  0x3a   :  { %1373 = vmatprep.subr.bf16.mxu1 %v1563_v0  ;;  %1445 = vmatprep.subr.bf16.mxu0 %v1563_v0  ;;  %v239_v57 = vand.u32 4294901760, %v238_v7  ;;  %v252_v58 = vsub.f32 %v1848_v35, %v251_v8  ;;  %v1461_v33 = vpack.c.bf16 %v258_v51, %v251_v8  ;;  %v878_v51 = vld [vmem:[%s2022_s6] sm:$0xff] }
  0x3b   :  { %1203 = vmatprep.mubr.msk.f32.mxu1 %vm1564_vm0, %v1565_v1  ;;  %1308 = vmatprep.mubr.msk.f32.mxu0 %vm1564_vm0, %v1565_v1  ;;  %v1464_v41 = vpack.c.bf16 %v272_v21, %v265_v17 }
  0x3c   :  { %v253_v24 = vand.u32 4294901760, %v252_v58  ;;  %v1386_v25 = vpack.c.bf16 %v246_v19, %v239_v57  ;;  %v1003_v19 = vld [vmem:[%s2021_s5] ss:$0 sm:$0xff] }
  0x3d   :  { %1375 = vmatpush3.bf16.msra.mxu1 %v1374_v38  ;;  %1447 = vmatpush3.bf16.msra.mxu0 %v1446_v30  ;;  %v266_v30 = vsub.f32 %v1868_v50, %v265_v17 }
  0x3e   :  { %1376 = vmatprep.subr.bf16.mxu1 %v1563_v0  ;;  %1448 = vmatprep.subr.bf16.mxu0 %v1563_v0  ;;  %v1389_v32 = vpack.c.bf16 %v260_v26, %v253_v24  ;;  %v1009_v24 = vld [vmem:[%s2021_s5 + $0x3] ss:$0 sm:$0xff]  ;;  %v1011_v26 = vld [vmem:[%s2021_s5 + $0x4] ss:$0 sm:$0xff] }
  0x3f   :  { %v267_v38 = vand.u32 4294901760, %v266_v30 }
  0x41   :  { %1378 = vmatpush3.bf16.msra.mxu1 %v1377_v54  ;;  %1450 = vmatpush3.bf16.msra.mxu0 %v1449_v59  ;;  %v1392_v34 = vpack.c.bf16 %v274_v53, %v267_v38  ;;  %v1395_v54 = vpack.c.bf16 %v1715_v39, %v1708_v36  ;;  %v1398_v59 = vpack.c.bf16 %v1736_v46, %v1734_v45  ;;  %v45_v39 = vlaneseq }
  0x42   :  { %1379 = vmatprep.subr.bf16.mxu1 %v1563_v0  ;;  %1451 = vmatprep.subr.bf16.mxu0 %v1563_v0  ;;  %v1401_v36 = vpack.c.bf16 %v1767_v56, %v1762_v55 }
  0x45   :  { %1381 = vmatpush3.bf16.msra.mxu1 %v1380_v10  ;;  %1453 = vmatpush3.bf16.msra.mxu0 %v1452_v5 }
  0x46   :  { %1382 = vmatprep.subr.bf16.mxu1 %v1563_v0  ;;  %1454 = vmatprep.subr.bf16.mxu0 %v1563_v0 }
  0x49   :  { %1384 = vmatpush3.bf16.msra.mxu1 %v1383_v18  ;;  %1456 = vmatpush3.bf16.msra.mxu0 %v1455_v52  ;;  %v1018_v18 = vld [vmem:[%s2022_s6 + $0x8] sm:$0xff] }
  0x4a   :  { %1385 = vmatprep.subr.bf16.mxu1 %v1563_v0  ;;  %1457 = vmatprep.subr.bf16.mxu0 %v1563_v0 }
  0x4d   :  { %1387 = vmatpush3.bf16.msra.mxu1 %v1386_v25  ;;  %1459 = vmatpush3.bf16.msra.mxu0 %v1458_v23  ;;  %v1005_v23 = vld [vmem:[%s2021_s5 + $0x1] ss:$0 sm:$0xff]  ;;  %v1013_v25 = vld [vmem:[%s2021_s5 + $0x5] ss:$0 sm:$0xff] }
  0x4e   :  { %1388 = vmatprep.subr.bf16.mxu1 %v1563_v0  ;;  %1460 = vmatprep.subr.bf16.mxu0 %v1563_v0 }
  0x51   :  { %1390 = vmatpush3.bf16.msra.mxu1 %v1389_v32  ;;  %1462 = vmatpush3.bf16.msra.mxu0 %v1461_v33 }
  0x52   :  { %1391 = vmatprep.subr.bf16.mxu1 %v1563_v0  ;;  %1463 = vmatprep.subr.bf16.mxu0 %v1563_v0 }
  0x55   :  { %1393 = vmatpush3.bf16.msra.mxu1 %v1392_v34  ;;  %1465 = vmatpush3.bf16.msra.mxu0 %v1464_v41 }
  0x56   :  { %1394 = vmatprep.subr.bf16.mxu1 %v1563_v0  ;;  %1466 = vmatprep.subr.bf16.mxu0 %v1563_v0 }
  0x58   :  { %1204 = vmatmul.mubr.f32.vlgmr.msra.gmra.mrb[0].mxu1 %v1710_v37  ;;  %1309 = vmatmul.mubr.f32.vlgmr.msra.gmra.mrb[0].mxu0 %v1710_v37 }
  0x59   :  { %1396 = vmatpush3.bf16.msra.mxu1 %v1395_v54  ;;  %1468 = vmatpush3.bf16.msra.mxu0 %v1641_v13  ;;  %v1404_v13 = vpack.c.bf16 %v1794_v4, %v1789_v3 }
  0x5a   :  { %1397 = vmatprep.subr.bf16.mxu1 %v1563_v0  ;;  %1469 = vmatprep.subr.bf16.mxu0 %v1563_v0 }
  0x5b   :  { %1238 = vmatprep.mubr.msk.f32.mxu1 %vm1564_vm0, %v1565_v1  ;;  %1343 = vmatprep.mubr.msk.f32.mxu0 %vm1564_vm0, %v1565_v1  ;;  %v1407_v1 = vpack.c.bf16 %v1819_v16, %v1814_v15 }
  0x5d   :  { %1399 = vmatpush3.bf16.msra.mxu1 %v1398_v59  ;;  %1471 = vmatpush3.bf16.msra.mxu0 %v1645_v14  ;;  %v1410_v14 = vpack.c.bf16 %v1837_v28, %v1832_v27 }
  0x5e   :  { %1400 = vmatprep.subr.bf16.mxu1 %v1563_v0  ;;  %1472 = vmatprep.subr.bf16.mxu0 %v1563_v0 }
  0x61   :  { %1402 = vmatpush3.bf16.msra.mxu1 %v1401_v36  ;;  %1474 = vmatpush3.bf16.msra.mxu0 %v1670_v22  ;;  %v1413_v22 = vpack.c.bf16 %v1853_v42, %v1848_v35 }
  0x62   :  { %1403 = vmatprep.subr.bf16.mxu1 %v1563_v0  ;;  %1475 = vmatprep.subr.bf16.mxu0 %v1563_v0 }
  0x65   :  { %1405 = vmatpush3.bf16.msra.mxu1 %v1404_v13  ;;  %1477 = vmatpush3.bf16.msra.mxu0 %v1692_v29  ;;  %v1416_v29 = vpack.c.bf16 %v1873_v2, %v1868_v50 }
  0x66   :  { %1406 = vmatprep.subr.bf16.mxu1 %v1563_v0  ;;  %1478 = vmatprep.subr.bf16.mxu0 %v1563_v0 }
  0x69   :  { %1408 = vmatpush3.bf16.msra.mxu1 %v1407_v1  ;;  %1480 = vmatpush3.bf16.msra.mxu0 %v1723_v40  ;;  %v48_v40 = vshrl.u32 %v45_v39, 7 }
  0x6a   :  { %1409 = vmatprep.subr.bf16.mxu1 %v1563_v0  ;;  %1481 = vmatprep.subr.bf16.mxu0 %v1563_v0 }
  0x6b   :  { %v54_v16 = vshra.s32 %v48_v40, 1 }
  0x6d   :  { %1411 = vmatpush3.bf16.msra.mxu1 %v1410_v14  ;;  %1483 = vmatpush3.bf16.msra.mxu0 %v1748_v49  ;;  %v52_v49 = vand.u32 1, %v48_v40  ;;  %v55_v43 = vand.u32 1, %v54_v16  ;;  %v1015_v40 = vld [vmem:[%s2021_s5 + $0x6] ss:$0 sm:$0xff]  ;;  %v1021_v16 = vld [vmem:[%s2023_s7 + $0x1] ss:$0 sm:$0xff] }
  0x6e   :  { %1412 = vmatprep.subr.bf16.mxu1 %v1563_v0  ;;  %1484 = vmatprep.subr.bf16.mxu0 %v1563_v0 }
  0x6f   :  { %vm53_vm1 = vcmp.eq.s32.totalorder %v52_v49, 0  ;;  %vm56_vm2 = vcmp.eq.s32.totalorder %v55_v43, 0 }
  0x71   :  { %1414 = vmatpush3.bf16.msra.mxu1 %v1413_v22  ;;  %1486 = vmatpush3.bf16.msra.mxu0 %v1779_v61 }
  0x72   :  { %1415 = vmatprep.subr.bf16.mxu1 %v1563_v0  ;;  %1487 = vmatprep.subr.bf16.mxu0 %v1563_v0 }
  0x75   :  { %1417 = vmatpush3.bf16.msra.mxu1 %v1416_v29  ;;  %1489 = vmatpush3.bf16.msra.mxu0 %v1806_v9  ;;  %v1017_v29 = vld [vmem:[%s2021_s5 + $0x7] ss:$0 sm:$0xff] }
  0x78   :  { %1239 = vmatmul.mubr.f32.vlgmr.msra.gmra.mrb[0].mxu1 %v1740_v48  ;;  %1344 = vmatmul.mubr.f32.vlgmr.msra.gmra.mrb[0].mxu0 %v1710_v37 }
  0x96   :  { %v718_v45 = vpop.permute.xlu0 %717  ;;  %v741_v4 = vpop.permute.xlu1 %740 }
  0x9a   :  { %v727_v0 = vpop.permute.xlu0 %726  ;;  %v751_v62 = vpop.permute.xlu1 %750 }
  0x9e   :  { %v772_v5 = vpop.permute.xlu1 %771  ;;  %v759_v7 = vpop.permute.xlu0 %758 }
  0xa2   :  { %v783_v21 = vpop.permute.xlu1 %782 }
  0xa3   :  { %v791_v30 = vmul.f32 %v1003_v19, %v783_v21  ;;  %v818_v32 = vmul.f32 %v1007_v20, %v783_v21  ;;  %v842_v34 = vmul.f32 %v1011_v26, %v783_v21 }
 0x14b   :  { %v415_v46 = vpop.f32.mrb[0].mxu1  ;;  %v710_v55 = vpop.f32.mrb[0].mxu0 }
 0x14c   :  { %v1490_v56 = vadd.f32 %v710_v55, %v415_v46  ;;  %v1240_v61 = vpop.f32.mrb[1].mxu1  ;;  %v1345_v3 = vpop.f32.mrb[1].mxu0  ;;  %v865_v46 = vmul.f32 %v1015_v40, %v783_v21 }
 0x14e   :  { %v721_v15 = vrot.slane %v1490_v56, 4  ;;  %v720_v9 = vmul.f32 %v1490_v56, %v718_v45 }
 0x150   :  { %v729_v27 = vmul.f32 %v727_v0, %v721_v15  ;;  %v731_v48 = vrot.slane %v721_v15, 1  ;;  %v732_v28 = vrot.slane %v721_v15, 7  ;;  %v1023_v15 = vld [vmem:[%s2023_s7 + $0x2] ss:$0 sm:$0xff] }
 0x152   :  { %v730_v37 = vadd.f32 %v729_v27, %v720_v9  ;;  %v735_v35 = vsel %vm53_vm1, %v731_v48, %v732_v28  ;;  %v1025_v9 = vld [vmem:[%s2023_s7 + $0x3] ss:$0 sm:$0xff] }
 0x153   :  { %v743_v42 = vmul.f32 %v741_v4, %v735_v35  ;;  %v745_v60 = vrot.slane %v735_v35, 4  ;;  %v1019_v4 = vld [vmem:[%s2023_s7] ss:$0 sm:$0xff] }
 0x155   :  { %v744_v47 = vadd.f32 %v743_v42, %v730_v37  ;;  %v753_v63 = vmul.f32 %v751_v62, %v745_v60 }
 0x157   :  { %v754_v44 = vadd.f32 %v753_v63, %v744_v47  ;;  %v46_v63 = vand.u32 127, %v45_v39 }
 0x159   :  { %v762_v50 = vrot.slane %v754_v44, 2  ;;  %v763_v2 = vrot.slane %v754_v44, 6  ;;  %v761_v10 = vmul.f32 %v759_v7, %v754_v44  ;;  %v49_v44 = vshra.s32 %v46_v63, 2 }
 0x15b   :  { %v766_v6 = vsel %vm56_vm2, %v762_v50, %v763_v2  ;;  %v1029_v50 = vld [vmem:[%s2023_s7 + $0x5] ss:$0 sm:$0xff]  ;;  %v50_v2 = vand.u32 1, %v49_v44 }
 0x15c   :  { %v774_v8 = vmul.f32 %v772_v5, %v766_v6  ;;  %v1027_v5 = vld [vmem:[%s2023_s7 + $0x4] ss:$0 sm:$0xff]  ;;  %v1033_v6 = vld [vmem:[%s2023_s7 + $0x7] ss:$0 sm:$0xff] }
 0x15d   :  { %vm51_vm3 = vcmp.eq.s32.totalorder %v50_v2, 0 }
 0x15e   :  { %v775_v11 = vadd.f32 %v774_v8, %v761_v10  ;;  %v1031_v8 = vld [vmem:[%s2023_s7 + $0x6] ss:$0 sm:$0xff] }
 0x160   :  { %808 = vrot.lane.b32.xlu0 %v775_v11, %s1567_s3 }
 0x164   :  { %796 = vperm.xlu0 %1510, %v1002_v12  }
 0x168   :  { %884 = vperm.xlu0 %1510, %v878_v51  }
 0x1d2   :  { %v809_v52 = vpop.permute.xlu0 %808 }
 0x1d3   :  { %v831_v57 = vrot.slane %v809_v52, 2  ;;  %v832_v58 = vrot.slane %v809_v52, 6 }
 0x1d5   :  { %v833_v17 = vsel %vm56_vm2, %v831_v57, %v832_v58 }
 0x1d6   :  { %855 = vrot.lane.b32.xlu1 %v833_v17, %s1567_s3 }
 0x1da   :  { %898 = vperm.xlu1 %1511, %v1018_v18  }
 0x1e3   :  { %v797_v31 = vpop.permute.xlu0 %796 }
 0x1e4   :  { %v805_v33 = vmul.f32 %v1005_v23, %v797_v31  ;;  %v827_v38 = vmul.f32 %v1009_v24, %v797_v31  ;;  %v851_v53 = vmul.f32 %v1013_v25, %v797_v31  ;;  %v874_v45 = vmul.f32 %v1017_v29, %v797_v31 }
 0x1e6   :  { %v806_v41 = vadd.f32 %v805_v33, %v791_v30  ;;  %v828_v54 = vadd.f32 %v827_v38, %v818_v32  ;;  %v852_v59 = vadd.f32 %v851_v53, %v842_v34  ;;  %v875_v49 = vadd.f32 %v874_v45, %v865_v46 }
 0x1e7   :  { %v885_v0 = vpop.permute.xlu0 %884 }
 0x1e8   :  { %v807_v36 = vmul.f32 %v806_v41, %v775_v11  ;;  %v829_v13 = vmul.f32 %v828_v54, %v809_v52  ;;  %v853_v14 = vmul.f32 %v852_v59, %v833_v17  ;;  %v893_v48 = vmul.f32 %v1019_v4, %v885_v0 }
 0x1e9   :  { %v919_v28 = vmul.f32 %v1023_v15, %v885_v0  ;;  %v947_v39 = vmul.f32 %v1027_v5, %v885_v0  ;;  %v969_v11 = vmul.f32 %v1031_v8, %v885_v0 }
 0x1ea   :  { %v830_v1 = vadd.f32 %v829_v13, %v807_v36 }
 0x1ec   :  { %v854_v22 = vadd.f32 %v853_v14, %v830_v1 }
 0x248   :  { %v856_v55 = vpop.permute.xlu1 %855 }
 0x249   :  { %v876_v56 = vmul.f32 %v875_v49, %v856_v55 }
 0x24b   :  { %v877_v61 = vadd.f32 %v876_v56, %v854_v22 }
 0x24d   :  { %v910_v3 = vrot.slane %v877_v61, 4 }
 0x24f   :  { %934 = vrot.lane.b32.xlu1 %v910_v3, %s1568_s28  ;;  %932 = vrot.lane.b32.xlu0 %v910_v3, %s1569_s29 }
 0x259   :  { %v899_v27 = vpop.permute.xlu1 %898 }
 0x25a   :  { %v907_v37 = vmul.f32 %v1021_v16, %v899_v27  ;;  %v928_v35 = vmul.f32 %v1025_v9, %v899_v27  ;;  %v956_v7 = vmul.f32 %v1029_v50, %v899_v27  ;;  %v978_v10 = vmul.f32 %v1033_v6, %v899_v27 }
 0x25c   :  { %v908_v42 = vadd.f32 %v907_v37, %v893_v48  ;;  %v929_v60 = vadd.f32 %v928_v35, %v919_v28  ;;  %v957_v51 = vadd.f32 %v956_v7, %v947_v39  ;;  %v979_v58 = vadd.f32 %v978_v10, %v969_v11 }
 0x25e   :  { %v909_v62 = vmul.f32 %v908_v42, %v877_v61  ;;  %v930_v43 = vmul.f32 %v929_v60, %v910_v3 }
 0x260   :  { %v931_v47 = vadd.f32 %v930_v43, %v909_v62 }
 0x2c1   :  { %v935_v12 = vpop.permute.xlu1 %934  ;;  %v933_v52 = vpop.permute.xlu0 %932 }
 0x2c2   :  { %v938_v57 = vsel %vm51_vm3, %v933_v52, %v935_v12 }
 0x2c3   :  { %v958_v17 = vmul.f32 %v957_v51, %v938_v57  ;;  %v960_v18 = vrot.slane %v938_v57, 4 }
 0x2c5   :  { %v959_v19 = vadd.f32 %v958_v17, %v931_v47  ;;  %v980_v20 = vmul.f32 %v979_v58, %v960_v18 }
 0x2c7   :  { %v981_v21 = vadd.f32 %v980_v20, %v959_v19 }
 0x2c9   :  { %982 = vst [vmem:[#allocation5] sm:$0xff] %v981_v21 }
 0x2ca   :  { %1545 = shalt.err (!%p1542_p12)
}
 0x2cb   :  { %s1546_s6 = scalar_lea.hbm %s2024_s8, 128 }
 0x2cc   :  { %p1547_p13 = scmp.ne.s32.totalorder %s2024_s8, %s1546_s6  ;;  %p1550_p0 = scmp.lt.u32.totalorder %s1546_s6, %s2024_s8 }
 0x2ce   :  { %p1552_p1 = pnand %p1550_p0, %p1547_p13 }
 0x2d0   :  { %1555 = shalt.err (!%p1552_p1)
}
 0x2d1   :  { %992 = dma.vmem_to_hbm [thread:$0]  %s990_s20, 128, %s2024_s8, [#allocation4]  }
 0x2d2   :  { %1558 = dma.done.wait [#allocation4], 128  }
 0x2d3   :  { %1559 = vsyncadd [#allocation4], 4294967168 }
 0x2d4   :  { %996 = vsyncpa [#allocation3], 1 }
 0x2d5   :  { %997 = vsyncpa [#allocation4], 1 }

</bundles_post_ra>
